<compile_context>
chip_gen: v6e
topology: v6e:2x2x1
jax: 0.10.0
libtpu: 0.0.40
codegen_flags: <defaults>
</compile_context>

<pallas_src>
import functools
import math

import jax
import jax.numpy as jnp
from jax.experimental import pallas as pl
from jax.experimental.pallas import tpu as pltpu


def _pick_tile(dim, target):
    """Largest clean tile: full dim if small / non-divisible, else the target."""
    if dim <= target:
        return dim
    if dim % target == 0:
        return target
    return dim


# ----------------------------------------------------------------------------
# Tiled linear:  out = x @ w + b   (w already laid out as (Din, Dout))
# ----------------------------------------------------------------------------
def linear_kernel(x_ref, w_ref, b_ref, o_ref, acc_ref):
    k = pl.program_id(2)

    @pl.when(k == 0)
    def _():
        acc_ref[...] = jnp.zeros_like(acc_ref)

    # bf16 MXU inputs, f32 accumulation.
    acc_ref[...] += jnp.dot(
        x_ref[...].astype(jnp.bfloat16),
        w_ref[...].astype(jnp.bfloat16),
        preferred_element_type=jnp.float32,
    )

    @pl.when(k == pl.num_programs(2) - 1)
    def _():
        o_ref[...] = (acc_ref[...] + b_ref[...]).astype(o_ref.dtype)


def pallas_linear(x2d, wt, b, *, tm=256, tn=256, tk=256, out_dtype=jnp.float32):
    """x2d: (N, Din); wt: (Din, Dout) pre-transposed; b: (Dout,)."""
    n, din = x2d.shape
    dout = wt.shape[1]
    tm = _pick_tile(n, tm)
    tn = _pick_tile(dout, tn)
    tk = _pick_tile(din, tk)
    grid = (n // tm, dout // tn, din // tk)
    return pl.pallas_call(
        linear_kernel,
        out_shape=jax.ShapeDtypeStruct((n, dout), out_dtype),
        grid=grid,
        in_specs=[
            pl.BlockSpec((tm, tk), lambda i, j, k: (i, k)),
            pl.BlockSpec((tk, tn), lambda i, j, k: (k, j)),
            pl.BlockSpec((1, tn), lambda i, j, k: (0, j)),
        ],
        out_specs=pl.BlockSpec((tm, tn), lambda i, j, k: (i, j)),
        scratch_shapes=[pltpu.VMEM((tm, tn), jnp.float32)],
        compiler_params=pltpu.CompilerParams(
            dimension_semantics=("parallel", "parallel", "arbitrary"),
            vmem_limit_bytes=32 * 1024 * 1024,
        ),
    )(x2d, wt, b.reshape(1, dout))


# ----------------------------------------------------------------------------
# Flash-style cross attention (heads folded into lanes, online softmax over kv)
# ----------------------------------------------------------------------------
def flash_attn_kernel(q_ref, k_ref, v_ref, o_ref, m_sc, l_sc, acc_sc,
                      *, n_heads, d_head, scale):
    kv = pl.program_id(2)

    @pl.when(kv == 0)
    def _():
        m_sc[...] = jnp.full_like(m_sc, -jnp.inf)
        l_sc[...] = jnp.zeros_like(l_sc)
        acc_sc[...] = jnp.zeros_like(acc_sc)

    # 1/sqrt(d_head) folded into q (tq x D multiply instead of tq x tkv).
    # bf16 MXU inputs; all softmax / accumulation math stays f32.
    q = (q_ref[0] * scale).astype(jnp.bfloat16)   # (tq, D)
    k = k_ref[0].astype(jnp.bfloat16)             # (tkv, D)
    v = v_ref[0].astype(jnp.bfloat16)             # (tkv, D)

    for h in range(n_heads):                      # static unroll over heads
        lo = h * d_head
        qh = q[:, lo:lo + d_head]                 # (tq, Dh)
        kh = k[:, lo:lo + d_head]                 # (tkv, Dh)
        vh = v[:, lo:lo + d_head]                 # (tkv, Dh)

        # scores = qh @ kh^T  -> (tq, tkv), f32 accumulation on the MXU.
        s = jax.lax.dot_general(
            qh, kh, (((1,), (1,)), ((), ())),
            preferred_element_type=jnp.float32)

        m_prev = m_sc[h]                          # (tq, 1)
        m_new = jnp.maximum(m_prev, jnp.max(s, axis=-1, keepdims=True))
        alpha = jnp.exp(m_prev - m_new)
        p = jnp.exp(s - m_new)                    # (tq, tkv)

        l_sc[h] = alpha * l_sc[h] + jnp.sum(p, axis=-1, keepdims=True)
        acc_sc[h] = alpha * acc_sc[h] + jnp.dot(
            p.astype(jnp.bfloat16), vh, preferred_element_type=jnp.float32)
        m_sc[h] = m_new

    @pl.when(kv == pl.num_programs(2) - 1)
    def _():
        # Re-fold heads into lanes: one lane-dense (tq, D) store.
        outs = [acc_sc[h] * pl.reciprocal(l_sc[h], approx=True)
                for h in range(n_heads)]
        o_ref[0] = jnp.concatenate(outs, axis=-1).astype(o_ref.dtype)


def pallas_cross_mha(q, k, v, *, n_heads, tq_target=256, tkv_target=512):
    """q: (B, Sq, D); k, v: (B, Skv, D) -> (B, Sq, D).  Heads folded in lanes."""
    bsz, sq, d = q.shape
    _, skv, _ = k.shape
    d_head = d // n_heads
    scale = 1.0 / math.sqrt(d_head)
    tq = _pick_tile(sq, tq_target)
    tkv = _pick_tile(skv, tkv_target)
    grid = (bsz, sq // tq, skv // tkv)

    q_spec = pl.BlockSpec((1, tq, d), lambda b, qi, ki: (b, qi, 0))
    kv_spec = pl.BlockSpec((1, tkv, d), lambda b, qi, ki: (b, ki, 0))
    o_spec = pl.BlockSpec((1, tq, d), lambda b, qi, ki: (b, qi, 0))

    return pl.pallas_call(
        functools.partial(flash_attn_kernel, n_heads=n_heads,
                          d_head=d_head, scale=scale),
        out_shape=jax.ShapeDtypeStruct((bsz, sq, d), jnp.float32),
        grid=grid,
        in_specs=[q_spec, kv_spec, kv_spec],
        out_specs=o_spec,
        scratch_shapes=[
            pltpu.VMEM((n_heads, tq, 1), jnp.float32),       # running max
            pltpu.VMEM((n_heads, tq, 1), jnp.float32),       # running denom
            pltpu.VMEM((n_heads, tq, d_head), jnp.float32),  # running numerator
        ],
        compiler_params=pltpu.CompilerParams(
            dimension_semantics=("parallel", "parallel", "arbitrary"),
            vmem_limit_bytes=32 * 1024 * 1024,
        ),
    )(q, k, v)


# ----------------------------------------------------------------------------
# Module-level forward (CrossAttention semantics)
# ----------------------------------------------------------------------------
def prepare_params(torch_params):
    """One-time layout prep: torch (Dout, Din) weights -> (Din, Dout)."""
    return {
        "q_w": jnp.transpose(torch_params["q_proj_w"]),
        "q_b": torch_params["q_proj_b"],
        "k_w": jnp.transpose(torch_params["k_proj_w"]),
        "k_b": torch_params["k_proj_b"],
        "v_w": jnp.transpose(torch_params["v_proj_w"]),
        "v_b": torch_params["v_proj_b"],
        "out_w": jnp.transpose(torch_params["out_proj_w"]),
        "out_b": torch_params["out_proj_b"],
    }


def cross_attention_forward(params, x, y, time=None, store_attention=True, *,
                            n_heads, tq_target=256, tkv_target=512):
    """x: (B, Sq, d_embed); y: (B, Skv, d_cross) -> (B, Sq, d_embed)."""
    del time  # unused by the reference forward
    # TODO(synk): store_attention / self.softmax_weights would require
    # materializing the full (Sq, Skv) probability matrix, which the
    # flash-style kernel deliberately avoids; not produced here.
    del store_attention

    bsz, sq, d_embed = x.shape
    _, skv, d_cross = y.shape

    q = pallas_linear(x.reshape(bsz * sq, d_embed), params["q_w"], params["q_b"])
    k = pallas_linear(y.reshape(bsz * skv, d_cross), params["k_w"], params["k_b"])
    v = pallas_linear(y.reshape(bsz * skv, d_cross), params["v_w"], params["v_b"])

    q = q.reshape(bsz, sq, d_embed)
    k = k.reshape(bsz, skv, d_embed)
    v = v.reshape(bsz, skv, d_embed)

    out = pallas_cross_mha(q, k, v, n_heads=n_heads,
                           tq_target=tq_target, tkv_target=tkv_target)

    out = pallas_linear(out.reshape(bsz * sq, d_embed),
                        params["out_w"], params["out_b"])
    return out.reshape(bsz, sq, d_embed)


# ----------------------------------------------------------------------------
# Pure-JAX reference (sanity check)
# ----------------------------------------------------------------------------
def reference_forward(params, x, y, *, n_heads):
    bsz, sq, d_embed = x.shape
    _, skv, _ = y.shape
    d_head = d_embed // n_heads
    q = x @ params["q_w"] + params["q_b"]
    k = y @ params["k_w"] + params["k_b"]
    v = y @ params["v_w"] + params["v_b"]

    def to_heads(t, s):
        return t.reshape(bsz, s, n_heads, d_head).transpose(0, 2, 1, 3)

    qh, kh, vh = to_heads(q, sq), to_heads(k, skv), to_heads(v, skv)
    w = jnp.einsum("bhqd,bhkd->bhqk", qh, kh) / math.sqrt(d_head)
    w = jax.nn.softmax(w, axis=-1)
    o = jnp.einsum("bhqk,bhkd->bhqd", w, vh)
    o = o.transpose(0, 2, 1, 3).reshape(bsz, sq, d_embed)
    return o @ params["out_w"] + params["out_b"]


# ----------------------------------------------------------------------------
# Main
# ----------------------------------------------------------------------------
if __name__ == "__main__":
    B, SQ, SKV = 2, 8, 16
    D_EMBED, D_CROSS, N_HEADS = 32, 48, 4

    key = jax.random.PRNGKey(0)
    (kx, ky, kq, kqb, kk, kkb, kv_, kvb, ko, kob) = jax.random.split(key, 10)

    def uinit(rk, shape, fan_in):
        bound = 1.0 / math.sqrt(fan_in)
        return jax.random.uniform(rk, shape, jnp.float32, -bound, bound)

    # PyTorch-Linear-style params (Dout, Din), then one-time layout prep.
    torch_params = {
        "q_proj_w": uinit(kq, (D_EMBED, D_EMBED), D_EMBED),
        "q_proj_b": uinit(kqb, (D_EMBED,), D_EMBED),
        "k_proj_w": uinit(kk, (D_EMBED, D_CROSS), D_CROSS),
        "k_proj_b": uinit(kkb, (D_EMBED,), D_CROSS),
        "v_proj_w": uinit(kv_, (D_EMBED, D_CROSS), D_CROSS),
        "v_proj_b": uinit(kvb, (D_EMBED,), D_CROSS),
        "out_proj_w": uinit(ko, (D_EMBED, D_EMBED), D_EMBED),
        "out_proj_b": uinit(kob, (D_EMBED,), D_EMBED),
    }
    params = prepare_params(torch_params)

    x = jax.random.normal(kx, (B, SQ, D_EMBED), jnp.float32)
    y = jax.random.normal(ky, (B, SKV, D_CROSS), jnp.float32)

    # tkv_target=8 forces two KV steps at this small Skv so the online-softmax
    # accumulation path is exercised.
    out = cross_attention_forward(params, x, y, time=None,
                                  n_heads=N_HEADS, tkv_target=8)
    out = jax.block_until_ready(out)
    assert out.shape == (B, SQ, D_EMBED)

    ref = reference_forward(params, x, y, n_heads=N_HEADS)
    max_err = float(jnp.max(jnp.abs(out - ref)))
    assert jnp.allclose(out, ref, atol=2e-2, rtol=2e-2), (
        f"mismatch vs reference (max abs err = {max_err})")

    print("KERNEL_OK")
</pallas_src>

<mosaic_0001>
module attributes {stable_mosaic.version = 11 : i64} {
  func.func @linear_kernel(%arg0: i32, %arg1: i32, %arg2: i32, %arg3: memref<16x32xf32, #tpu.memory_space<vmem>>, %arg4: memref<32x32xf32, #tpu.memory_space<vmem>>, %arg5: memref<1x32xf32, #tpu.memory_space<vmem>>, %arg6: memref<16x32xf32, #tpu.memory_space<vmem>>, %arg7: memref<16x32xf32, #tpu.memory_space<vmem>>) attributes {dimension_semantics = [#tpu.dimension_semantics<parallel>, #tpu.dimension_semantics<parallel>, #tpu.dimension_semantics<arbitrary>], iteration_bounds = array<i64: 1, 1, 1>, scalar_prefetch = 0 : i64, scratch_operands = 1 : i64, tpu.core_type = #tpu.core_type<tc>, window_params = [{transform_indices = @transform_0, window_bounds = array<i64: 16, 32>}, {transform_indices = @transform_1, window_bounds = array<i64: 32, 32>}, {transform_indices = @transform_2, window_bounds = array<i64: 1, 32>}, {transform_indices = @transform_3, window_bounds = array<i64: 16, 32>}]} {
    %c0_i32 = arith.constant 0 : i32
    %0 = arith.cmpi eq, %arg2, %c0_i32 : i32
    %1 = arith.extui %0 : i1 to i32
    %c0_i32_0 = arith.constant 0 : i32
    %2 = arith.cmpi ne, %1, %c0_i32_0 : i32
    scf.if %2 {
      %cst_10 = arith.constant 0.000000e+00 : f32
      %14 = vector.broadcast %cst_10 : f32 to vector<16x32xf32>
      %c0_11 = arith.constant 0 : index
      %c0_12 = arith.constant 0 : index
      %15 = vector.load %arg7[%c0_11, %c0_12] : memref<16x32xf32, #tpu.memory_space<vmem>>, vector<16x32xf32>
      tpu.vector_store %arg7[%c0_11, %c0_12], %14 {strides = array<i32>} : memref<16x32xf32, #tpu.memory_space<vmem>>, vector<16x32xf32>,
    } else {
    }
    %c0 = arith.constant 0 : index
    %c0_1 = arith.constant 0 : index
    %3 = vector.load %arg7[%c0, %c0_1] : memref<16x32xf32, #tpu.memory_space<vmem>>, vector<16x32xf32>
    %c0_2 = arith.constant 0 : index
    %c0_3 = arith.constant 0 : index
    %4 = vector.load %arg3[%c0_2, %c0_3] : memref<16x32xf32, #tpu.memory_space<vmem>>, vector<16x32xf32>
    %5 = arith.truncf %4 : vector<16x32xf32> to vector<16x32xbf16>
    %c0_4 = arith.constant 0 : index
    %c0_5 = arith.constant 0 : index
    %6 = vector.load %arg4[%c0_4, %c0_5] : memref<32x32xf32, #tpu.memory_space<vmem>>, vector<32x32xf32>
    %7 = arith.truncf %6 : vector<32x32xf32> to vector<32x32xbf16>
    %cst = arith.constant dense<0.000000e+00> : vector<16x32xf32>
    %8 = tpu.matmul %5, %7, %cst {dimension_numbers = #tpu.dot_dimension_numbers<[1], [0], [0], [1], [0, 0, 1, 1], [], []>} : vector<16x32xbf16>, vector<32x32xbf16>, vector<16x32xf32> -> vector<16x32xf32>
    %9 = arith.addf %3, %8 : vector<16x32xf32>
    %c0_6 = arith.constant 0 : index
    %c0_7 = arith.constant 0 : index
    %10 = vector.load %arg7[%c0_6, %c0_7] : memref<16x32xf32, #tpu.memory_space<vmem>>, vector<16x32xf32>
    tpu.vector_store %arg7[%c0_6, %c0_7], %9 {strides = array<i32>} : memref<16x32xf32, #tpu.memory_space<vmem>>, vector<16x32xf32>,
    %c0_i32_8 = arith.constant 0 : i32
    %11 = arith.cmpi eq, %arg2, %c0_i32_8 : i32
    %12 = arith.extui %11 : i1 to i32
    %c0_i32_9 = arith.constant 0 : i32
    %13 = arith.cmpi ne, %12, %c0_i32_9 : i32
    scf.if %13 {
      %c0_10 = arith.constant 0 : index
      %c0_11 = arith.constant 0 : index
      %14 = vector.load %arg7[%c0_10, %c0_11] : memref<16x32xf32, #tpu.memory_space<vmem>>, vector<16x32xf32>
      %c0_12 = arith.constant 0 : index
      %c0_13 = arith.constant 0 : index
      %15 = vector.load %arg5[%c0_12, %c0_13] : memref<1x32xf32, #tpu.memory_space<vmem>>, vector<1x32xf32>
      %16 = vector.broadcast %15 : vector<1x32xf32> to vector<16x32xf32>
      %17 = arith.addf %14, %16 : vector<16x32xf32>
      %c0_14 = arith.constant 0 : index
      %c0_15 = arith.constant 0 : index
      %18 = vector.load %arg6[%c0_14, %c0_15] : memref<16x32xf32, #tpu.memory_space<vmem>>, vector<16x32xf32>
      tpu.vector_store %arg6[%c0_14, %c0_15], %17 {strides = array<i32>} : memref<16x32xf32, #tpu.memory_space<vmem>>, vector<16x32xf32>,
    } else {
    }
    return
  }
  func.func @transform_0(%arg0: i32, %arg1: i32, %arg2: i32) -> (i32, i32) {
    %c0_i32 = arith.constant 0 : i32
    return %arg0, %arg2 : i32, i32
  }
  func.func @transform_1(%arg0: i32, %arg1: i32, %arg2: i32) -> (i32, i32) {
    %c0_i32 = arith.constant 0 : i32
    return %arg2, %arg1 : i32, i32
  }
  func.func @transform_2(%arg0: i32, %arg1: i32, %arg2: i32) -> (i32, i32) {
    %c0_i32 = arith.constant 0 : i32
    %c0_i32_0 = arith.constant 0 : i32
    return %c0_i32, %arg1 : i32, i32
  }
  func.func @transform_3(%arg0: i32, %arg1: i32, %arg2: i32) -> (i32, i32) {
    %c0_i32 = arith.constant 0 : i32
    return %arg0, %arg1 : i32, i32
  }
}

</mosaic_0001>

<bundles_post_ra>
// kernel: tpu_custom_call.1
= control target key start
LH: loop header
LB: loop body
LE: loop exit
PB: predicated region body
PF: predicated region fallthrough
CT: control target
= control target key end

     0   :  { %8 = vsyncpa [#allocation4], 0  ;;  %s286_s0 = inlined_call_operand.hbm [shape: f32[16,32], index: 0, kind: input, shape index: {}]   ;;  %s287_s1 = inlined_call_operand.hbm [shape: f32[32,32], index: 1, kind: input, shape index: {}]   ;;  %s288_s2 = inlined_call_operand.vmem [shape: f32[1,32], index: 2, kind: input, shape index: {}]   ;;  %s289_s3 = inlined_call_operand.hbm [shape: f32[16,32], index: 3, kind: output, shape index: {}]  }
   0x1   :  { %9 = vsyncpa [#allocation7], 0 }
   0x2   :  { %10 = vsyncpa [#allocation5], 0  ;;  %s231_s12 = smov [#allocation3]  }
   0x3   :  { %s16_s13 = sshll.u32 %s231_s12, 4  ;;  %s17_s13 = int_to_ptr.vmem [resolvable:$true] %s16_s13 }
   0x4   :  { %s173_s14 = scalar_lea.vmem %s17_s13, 256  ;;  %p178_p1 = scmp.lt.s32.totalorder %s17_s13, %s17_s13 }
   0x5   :  { %p174_p0 = scmp.ne.s32.totalorder %s17_s13, %s173_s14  ;;  %p179_p2 = scmp.lt.s32.totalorder %s173_s14, %s173_s14 }
   0x7   :  { %p180_p3 = por %p179_p2, %p178_p1 }
   0x9   :  { %p181_p4 = pnand %p180_p3, %p174_p0 }
   0xb   :  { %184 = shalt.err (!%p181_p4)
}
   0xc   :  { %s232_s15 = smov 128   ;;  %s233_s16 = smov 8  }
   0xd   :  { %22 = dma.hbm_to_vmem [thread:$0]  %s286_s0, 256, %s17_s13, [#allocation4], %s232_s15, %s232_s15, %s233_s16  }
   0xe   :  { %s234_s19 = smov [#allocation6]  }
   0xf   :  { %s28_s20 = sshll.u32 %s234_s19, 4  ;;  %s29_s20 = int_to_ptr.vmem [resolvable:$true] %s28_s20 }
  0x10   :  { %s193_s21 = scalar_lea.vmem %s29_s20, 512  ;;  %p198_p6 = scmp.lt.s32.totalorder %s29_s20, %s29_s20 }
  0x11   :  { %p194_p5 = scmp.ne.s32.totalorder %s29_s20, %s193_s21  ;;  %p199_p7 = scmp.lt.s32.totalorder %s193_s21, %s193_s21 }
  0x13   :  { %p200_p8 = por %p199_p7, %p198_p6 }
  0x15   :  { %p201_p9 = pnand %p200_p8, %p194_p5 }
  0x17   :  { %204 = shalt.err (!%p201_p9)
}
  0x18   :  { %34 = dma.hbm_to_vmem [thread:$0]  %s287_s1, 512, %s29_s20, [#allocation7], %s232_s15, %s232_s15, %s233_s16  }
  0x19   :  { %225 = dma.done.wait [#allocation4], 256  }
  0x1a   :  { %226 = vsyncadd [#allocation4], 4294967040 }
  0x1b   :  { %227 = dma.done.wait [#allocation7], 512  }
  0x1c   :  { %228 = vsyncadd [#allocation7], 4294966784  ;;  %vm48_vm0 = vcmask 261120   ;;  %v235_v0 = vmov 0.0   ;;  %vm236_vm1 = vmmov 0   ;;  %v58_v1 = vld [vmem:[#allocation6 + $0x10] sm:$0xff] }
  0x1d   :  { %150 = vmatprep.subr.bf16.mxu0 %v235_v0  ;;  %154 = vmatprep.mubr.msk.bf16.mxu0 %vm236_vm1, %v235_v0  ;;  %49 = vst.msk [vmem:[#allocation2] sm:$0xff] %vm48_vm0, %v235_v0  ;;  %50 = vst.msk [vmem:[#allocation2 + $0x8] sm:$0xff] %vm48_vm0, %v235_v0  ;;  %v59_v2 = vld [vmem:[#allocation6 + $0x18] sm:$0xff]  ;;  %v56_v3 = vld [vmem:[#allocation6] sm:$0xff]  ;;  %s237_s24 = smov [#allocation8]  }
  0x1e   :  { %v61_v4 = vpack.c.bf16 %v59_v2, %v58_v1  ;;  %v57_v5 = vld [vmem:[#allocation6 + $0x8] sm:$0xff]  ;;  %v53_v7 = vld [vmem:[#allocation3] sm:$0xff]  ;;  %v54_v8 = vld [vmem:[#allocation3 + $0x8] sm:$0xff]  ;;  %s132_s25 = sshll.u32 %s237_s24, 4  ;;  %s133_s25 = int_to_ptr.vmem [resolvable:$true] %s132_s25 }
  0x1f   :  { %v60_v6 = vpack.c.bf16 %v57_v5, %v56_v3  ;;  %v55_v9 = vpack.c.bf16 %v54_v8, %v53_v7  ;;  %v146_v18 = vld [vmem:[%s288_s2] ss:$0 sm:$0xff]  ;;  %s205_s26 = scalar_lea.vmem %s133_s25, 256  ;;  %p210_p11 = scmp.lt.s32.totalorder %s133_s25, %s133_s25 }
  0x20   :  { %151 = vmatpush3.bf16.msra.mxu0 %v61_v4  ;;  %p206_p10 = scmp.ne.s32.totalorder %s133_s25, %s205_s26  ;;  %p211_p12 = scmp.lt.s32.totalorder %s205_s26, %s205_s26 }
  0x21   :  { %152 = vmatprep.subr.bf16.mxu0 %v235_v0 }
  0x22   :  { %p212_p13 = por %p211_p12, %p210_p11 }
  0x24   :  { %153 = vmatpush3.bf16.msra.mxu0 %v60_v6  ;;  %v51_v10 = vld [vmem:[#allocation2] sm:$0xff]  ;;  %v52_v14 = vld [vmem:[#allocation2 + $0x8] sm:$0xff]  ;;  %p213_p0 = pnand %p212_p13, %p206_p10 }
  0x27   :  { %155 = vmatmul.mubr.msk.bf16.vlgmr.msra.gmra.mxu0 %vm48_vm0, %v55_v9 }
  0xe7   :  { %v100_v11 = vpop.f32.mrf.mxu0 }
  0xe8   :  { %v107_v12 = vadd.f32 %v100_v11, %v51_v10 }
  0xe9   :  { %v156_v13 = vpop.f32.mrf.mxu0 }
  0xea   :  { %109 = vst.msk [vmem:[#allocation2] sm:$0xff] %vm48_vm0, %v107_v12 }
  0xeb   :  { %v103_v15 = vpop.f32.mrf.mxu0 }
  0xec   :  { %v108_v16 = vadd.f32 %v103_v15, %v52_v14 }
  0xed   :  { %v157_v17 = vpop.f32.mrf.mxu0 }
  0xee   :  { %110 = vst.msk [vmem:[#allocation2 + $0x8] sm:$0xff] %vm48_vm0, %v108_v16 }
  0xf1   :  { %v114_v19 = vld [vmem:[#allocation2] sm:$0xff] }
  0xf2   :  { %v123_v20 = vadd.f32 %v146_v18, %v114_v19 }
  0xf4   :  { %125 = vst.msk [vmem:[#allocation8] sm:$0xff] %vm48_vm0, %v123_v20 }
  0xf5   :  { %v115_v21 = vld [vmem:[#allocation2 + $0x8] sm:$0xff] }
  0xf6   :  { %v124_v22 = vadd.f32 %v146_v18, %v115_v21 }
  0xf8   :  { %126 = vst.msk [vmem:[#allocation8 + $0x8] sm:$0xff] %vm48_vm0, %v124_v22 }
  0xf9   :  { %216 = shalt.err (!%p213_p0)
}
  0xfa   :  { %138 = dma.vmem_to_hbm [thread:$0]  %s133_s25, 256, %s289_s3, [#allocation5], %s232_s15, %s232_s15, %s233_s16  }
  0xfb   :  { %229 = dma.done.wait [#allocation5], 256  }
  0xfc   :  { %230 = vsyncadd [#allocation5], 4294967040 }
  0xfd   :  { %142 = vsyncpa [#allocation4], 1 }
  0xfe   :  { %143 = vsyncpa [#allocation7], 1 }
  0xff   :  { %144 = vsyncpa [#allocation5], 1 }

</bundles_post_ra>
